<compile_context>
chip_gen: v5e
topology: v5e:2x2
jax: 0.10.0
libtpu: 0.0.40
codegen_flags: <defaults>
</compile_context>

<pallas_src>
import jax
import jax.numpy as jnp
from jax.experimental import pallas as pl
from jax.experimental.pallas import tpu as pltpu


NEG_SLOPE = 0.01       # torch.nn.LeakyReLU default negative_slope
H1_PAD = 512           # 400 padded to 4 x 128 lanes
H2_PAD = 256           # 200 padded to 2 x 128 lanes


def _round_up(x, m):
    return ((x + m - 1) // m) * m


def _leaky_relu(x):
    # max(x, slope*x) == LeakyReLU(x) for 0 < slope < 1 (2 VPU ops, no select)
    return jnp.maximum(x, NEG_SLOPE * x)


def qnetwork_kernel(x_ref, w1_ref, b1_ref, w2_ref, b2_ref, w3_ref, b3_ref,
                    o_ref):
    """One batch tile: three chained bf16 MXU matmuls (f32 accumulate) with
    f32 bias + LeakyReLU between them, final clamp, lane-dense f32 store."""
    h1 = jnp.dot(x_ref[...], w1_ref[...], preferred_element_type=jnp.float32)
    h1 = _leaky_relu(h1 + b1_ref[...])

    h2 = jnp.dot(h1.astype(jnp.bfloat16), w2_ref[...],
                 preferred_element_type=jnp.float32)
    h2 = _leaky_relu(h2 + b2_ref[...])

    h3 = jnp.dot(h2.astype(jnp.bfloat16), w3_ref[...],
                 preferred_element_type=jnp.float32)
    h3 = _leaky_relu(h3 + b3_ref[...])

    o_ref[...] = jnp.clip(h3, -2000.0, 2000.0)


def prepare_params(params, in_dim, out_dim):
    """Pad logical (PyTorch-shaped, [in,out]) f32 params to lane-multiple
    shapes and cast weights to bf16 (biases stay f32)."""
    w1, b1, w2, b2, w3, b3 = params
    assert w1.shape[0] == in_dim, (
        f"W1 fan-in {w1.shape[0]} != state_dim + action_dim {in_dim}")
    out_pad = _round_up(out_dim, 128)

    def pad2(x, r, c):
        return jnp.pad(x, ((0, r - x.shape[0]), (0, c - x.shape[1])))

    bf = jnp.bfloat16
    return (pad2(w1, in_dim, H1_PAD).astype(bf),        # [in_dim, 512]
            pad2(b1, 1, H1_PAD).astype(jnp.float32),    # [1, 512]
            pad2(w2, H1_PAD, H2_PAD).astype(bf),        # [512, 256]
            pad2(b2, 1, H2_PAD).astype(jnp.float32),    # [1, 256]
            pad2(w3, H2_PAD, out_pad).astype(bf),       # [256, out_pad]
            pad2(b3, 1, out_pad).astype(jnp.float32))   # [1, out_pad]


def qnetwork_forward(s, a, kernel_params, out_dim, *, tb_max=1024):
    """s: [B, state_dim], a: [B, action_dim] -> q: [B, out_dim] (f32)."""
    w1, b1, w2, b2, w3, b3 = kernel_params
    B, state_dim = s.shape
    action_dim = a.shape[1]
    in_dim = state_dim + action_dim
    assert w1.shape[0] == in_dim
    out_pad = w3.shape[1]

    # Fused concat + bf16 cast in the wrapper: one dense [B, in_dim] bf16 LHS
    # feeds a single layer-1 MXU dot inside the kernel.
    x = jnp.concatenate(
        [s.astype(jnp.bfloat16), a.astype(jnp.bfloat16)], axis=1)

    # Batch tiling: 16-row multiples (bf16 sublane packing); at least 2 grid
    # steps when the batch allows it so v7x megacore gets both TensorCores;
    # tb capped at tb_max to keep double-buffered tiles small on v5e/v6e.
    b16 = max(_round_up(B, 16), 16)
    n_tiles = max(2, pl.cdiv(b16, tb_max)) if b16 >= 32 else 1
    tb = _round_up(pl.cdiv(b16, n_tiles), 16)
    bp = tb * n_tiles

    if bp != B:
        x = jnp.pad(x, ((0, bp - B), (0, 0)))

    batch_map = lambda i: (i, 0)
    const_map = lambda i: (0, 0)   # weights DMA'd once, resident across tiles

    out = pl.pallas_call(
        qnetwork_kernel,
        out_shape=jax.ShapeDtypeStruct((bp, out_pad), jnp.float32),
        grid=(n_tiles,),
        in_specs=[
            pl.BlockSpec((tb, in_dim), batch_map),
            pl.BlockSpec(w1.shape, const_map),
            pl.BlockSpec(b1.shape, const_map),
            pl.BlockSpec(w2.shape, const_map),
            pl.BlockSpec(b2.shape, const_map),
            pl.BlockSpec(w3.shape, const_map),
            pl.BlockSpec(b3.shape, const_map),
        ],
        out_specs=pl.BlockSpec((tb, out_pad), batch_map),
        compiler_params=pltpu.CompilerParams(
            dimension_semantics=("parallel",)),
    )(x, w1, b1, w2, b2, w3, b3)

    return out[:B, :out_dim]


def init_params(key, in_dim, out_dim):
    """Deterministic init mimicking torch.nn.Linear (uniform +-1/sqrt(fan_in)).
    Weights stored as [in, out] (transposed vs. PyTorch's [out, in])."""
    dims = [(in_dim, 400), (400, 200), (200, out_dim)]
    params = []
    for (fan_in, fan_out) in dims:
        key, kw, kb = jax.random.split(key, 3)
        bound = 1.0 / jnp.sqrt(float(fan_in))
        w = jax.random.uniform(kw, (fan_in, fan_out), jnp.float32,
                               minval=-bound, maxval=bound)
        b = jax.random.uniform(kb, (1, fan_out), jnp.float32,
                               minval=-bound, maxval=bound)
        params += [w, b]
    return tuple(params)


def reference_forward(s, a, params):
    """Pure-JAX reference with the same numerics as the kernel
    (bf16 matmul operands, f32 accumulation / elementwise)."""
    w1, b1, w2, b2, w3, b3 = params
    bf = jnp.bfloat16

    def dense(h, w, b):
        y = jnp.dot(h.astype(bf), w.astype(bf),
                    preferred_element_type=jnp.float32) + b
        return _leaky_relu(y)

    x = jnp.concatenate([s, a], axis=1)
    h = dense(x, w1, b1)
    h = dense(h, w2, b2)
    h = dense(h, w3, b3)
    return jnp.clip(h, -2000.0, 2000.0)


if __name__ == "__main__":
    key = jax.random.PRNGKey(0)
    k_s, k_a, k_p = jax.random.split(key, 3)

    batch = 8
    state_dim = 8
    action_dim = 4
    in_dim = state_dim + action_dim
    out_dim = 4

    s = jax.random.normal(k_s, (batch, state_dim), jnp.float32)
    a = jax.random.normal(k_a, (batch, action_dim), jnp.float32)

    params = init_params(k_p, in_dim, out_dim)        # logical f32 params
    kparams = prepare_params(params, in_dim, out_dim)  # padded / bf16

    q = qnetwork_forward(s, a, kparams, out_dim)
    jax.block_until_ready(q)

    q_ref = reference_forward(s, a, params)
    assert q.shape == (batch, out_dim)
    assert jnp.allclose(q, q_ref, atol=2e-3, rtol=2e-3), "mismatch vs reference"

    print("KERNEL_OK")
</pallas_src>

<mosaic_0001>
module attributes {stable_mosaic.version = 11 : i64} {
  func.func @qnetwork_kernel(%arg0: i32, %arg1: memref<16x12xbf16, #tpu.memory_space<vmem>>, %arg2: memref<12x512xbf16, #tpu.memory_space<vmem>>, %arg3: memref<1x512xf32, #tpu.memory_space<vmem>>, %arg4: memref<512x256xbf16, #tpu.memory_space<vmem>>, %arg5: memref<1x256xf32, #tpu.memory_space<vmem>>, %arg6: memref<256x128xbf16, #tpu.memory_space<vmem>>, %arg7: memref<1x128xf32, #tpu.memory_space<vmem>>, %arg8: memref<16x128xf32, #tpu.memory_space<vmem>>) attributes {dimension_semantics = [#tpu.dimension_semantics<parallel>], iteration_bounds = array<i64: 1>, scalar_prefetch = 0 : i64, scratch_operands = 0 : i64, tpu.core_type = #tpu.core_type<tc>, window_params = [{transform_indices = @transform_0, window_bounds = array<i64: 16, 12>}, {pipeline_mode = #tpu.pipeline_mode<synchronous>, transform_indices = @transform_1, window_bounds = array<i64: 12, 512>}, {pipeline_mode = #tpu.pipeline_mode<synchronous>, transform_indices = @transform_2, window_bounds = array<i64: 1, 512>}, {pipeline_mode = #tpu.pipeline_mode<synchronous>, transform_indices = @transform_3, window_bounds = array<i64: 512, 256>}, {pipeline_mode = #tpu.pipeline_mode<synchronous>, transform_indices = @transform_4, window_bounds = array<i64: 1, 256>}, {pipeline_mode = #tpu.pipeline_mode<synchronous>, transform_indices = @transform_5, window_bounds = array<i64: 256, 128>}, {pipeline_mode = #tpu.pipeline_mode<synchronous>, transform_indices = @transform_6, window_bounds = array<i64: 1, 128>}, {transform_indices = @transform_7, window_bounds = array<i64: 16, 128>}]} {
    %c0 = arith.constant 0 : index
    %c0_0 = arith.constant 0 : index
    %0 = vector.load %arg1[%c0, %c0_0] : memref<16x12xbf16, #tpu.memory_space<vmem>>, vector<16x12xbf16>
    %c0_1 = arith.constant 0 : index
    %c0_2 = arith.constant 0 : index
    %1 = vector.load %arg2[%c0_1, %c0_2] : memref<12x512xbf16, #tpu.memory_space<vmem>>, vector<12x512xbf16>
    %cst = arith.constant dense<0.000000e+00> : vector<16x512xf32>
    %2 = tpu.matmul %0, %1, %cst {dimension_numbers = #tpu.dot_dimension_numbers<[1], [0], [0], [1], [0, 0, 1, 1], [], []>} : vector<16x12xbf16>, vector<12x512xbf16>, vector<16x512xf32> -> vector<16x512xf32>
    %c0_3 = arith.constant 0 : index
    %c0_4 = arith.constant 0 : index
    %3 = vector.load %arg3[%c0_3, %c0_4] : memref<1x512xf32, #tpu.memory_space<vmem>>, vector<1x512xf32>
    %4 = vector.broadcast %3 : vector<1x512xf32> to vector<16x512xf32>
    %5 = arith.addf %2, %4 : vector<16x512xf32>
    %cst_5 = arith.constant 0.00999999977 : f32
    %6 = vector.broadcast %cst_5 : f32 to vector<16x512xf32>
    %7 = arith.mulf %6, %5 : vector<16x512xf32>
    %8 = arith.maximumf %5, %7 : vector<16x512xf32>
    %9 = arith.truncf %8 : vector<16x512xf32> to vector<16x512xbf16>
    %c0_6 = arith.constant 0 : index
    %c0_7 = arith.constant 0 : index
    %10 = vector.load %arg4[%c0_6, %c0_7] : memref<512x256xbf16, #tpu.memory_space<vmem>>, vector<512x256xbf16>
    %cst_8 = arith.constant dense<0.000000e+00> : vector<16x256xf32>
    %11 = tpu.matmul %9, %10, %cst_8 {dimension_numbers = #tpu.dot_dimension_numbers<[1], [0], [0], [1], [0, 0, 1, 1], [], []>} : vector<16x512xbf16>, vector<512x256xbf16>, vector<16x256xf32> -> vector<16x256xf32>
    %c0_9 = arith.constant 0 : index
    %c0_10 = arith.constant 0 : index
    %12 = vector.load %arg5[%c0_9, %c0_10] : memref<1x256xf32, #tpu.memory_space<vmem>>, vector<1x256xf32>
    %13 = vector.broadcast %12 : vector<1x256xf32> to vector<16x256xf32>
    %14 = arith.addf %11, %13 : vector<16x256xf32>
    %cst_11 = arith.constant 0.00999999977 : f32
    %15 = vector.broadcast %cst_11 : f32 to vector<16x256xf32>
    %16 = arith.mulf %15, %14 : vector<16x256xf32>
    %17 = arith.maximumf %14, %16 : vector<16x256xf32>
    %18 = arith.truncf %17 : vector<16x256xf32> to vector<16x256xbf16>
    %c0_12 = arith.constant 0 : index
    %c0_13 = arith.constant 0 : index
    %19 = vector.load %arg6[%c0_12, %c0_13] : memref<256x128xbf16, #tpu.memory_space<vmem>>, vector<256x128xbf16>
    %cst_14 = arith.constant dense<0.000000e+00> : vector<16x128xf32>
    %20 = tpu.matmul %18, %19, %cst_14 {dimension_numbers = #tpu.dot_dimension_numbers<[1], [0], [0], [1], [0, 0, 1, 1], [], []>} : vector<16x256xbf16>, vector<256x128xbf16>, vector<16x128xf32> -> vector<16x128xf32>
    %c0_15 = arith.constant 0 : index
    %c0_16 = arith.constant 0 : index
    %21 = vector.load %arg7[%c0_15, %c0_16] : memref<1x128xf32, #tpu.memory_space<vmem>>, vector<1x128xf32>
    %22 = vector.broadcast %21 : vector<1x128xf32> to vector<16x128xf32>
    %23 = arith.addf %20, %22 : vector<16x128xf32>
    %cst_17 = arith.constant 0.00999999977 : f32
    %24 = vector.broadcast %cst_17 : f32 to vector<16x128xf32>
    %25 = arith.mulf %24, %23 : vector<16x128xf32>
    %26 = arith.maximumf %23, %25 : vector<16x128xf32>
    %cst_18 = arith.constant -2.000000e+03 : f32
    %cst_19 = arith.constant 2.000000e+03 : f32
    %27 = vector.broadcast %cst_18 : f32 to vector<16x128xf32>
    %28 = arith.maximumf %27, %26 : vector<16x128xf32>
    %29 = vector.broadcast %cst_19 : f32 to vector<16x128xf32>
    %30 = arith.minimumf %29, %28 : vector<16x128xf32>
    %c0_20 = arith.constant 0 : index
    %c0_21 = arith.constant 0 : index
    %31 = vector.load %arg8[%c0_20, %c0_21] : memref<16x128xf32, #tpu.memory_space<vmem>>, vector<16x128xf32>
    tpu.vector_store %arg8[%c0_20, %c0_21], %30 {strides = array<i32>} : memref<16x128xf32, #tpu.memory_space<vmem>>, vector<16x128xf32>,
    return
  }
  func.func @transform_0(%arg0: i32) -> (i32, i32) {
    %c0_i32 = arith.constant 0 : i32
    %c0_i32_0 = arith.constant 0 : i32
    return %arg0, %c0_i32 : i32, i32
  }
  func.func @transform_1(%arg0: i32) -> (i32, i32) {
    %c0_i32 = arith.constant 0 : i32
    %c0_i32_0 = arith.constant 0 : i32
    %c0_i32_1 = arith.constant 0 : i32
    return %c0_i32, %c0_i32_0 : i32, i32
  }
  func.func @transform_2(%arg0: i32) -> (i32, i32) {
    %c0_i32 = arith.constant 0 : i32
    %c0_i32_0 = arith.constant 0 : i32
    %c0_i32_1 = arith.constant 0 : i32
    return %c0_i32, %c0_i32_0 : i32, i32
  }
  func.func @transform_3(%arg0: i32) -> (i32, i32) {
    %c0_i32 = arith.constant 0 : i32
    %c0_i32_0 = arith.constant 0 : i32
    %c0_i32_1 = arith.constant 0 : i32
    return %c0_i32, %c0_i32_0 : i32, i32
  }
  func.func @transform_4(%arg0: i32) -> (i32, i32) {
    %c0_i32 = arith.constant 0 : i32
    %c0_i32_0 = arith.constant 0 : i32
    %c0_i32_1 = arith.constant 0 : i32
    return %c0_i32, %c0_i32_0 : i32, i32
  }
  func.func @transform_5(%arg0: i32) -> (i32, i32) {
    %c0_i32 = arith.constant 0 : i32
    %c0_i32_0 = arith.constant 0 : i32
    %c0_i32_1 = arith.constant 0 : i32
    return %c0_i32, %c0_i32_0 : i32, i32
  }
  func.func @transform_6(%arg0: i32) -> (i32, i32) {
    %c0_i32 = arith.constant 0 : i32
    %c0_i32_0 = arith.constant 0 : i32
    %c0_i32_1 = arith.constant 0 : i32
    return %c0_i32, %c0_i32_0 : i32, i32
  }
  func.func @transform_7(%arg0: i32) -> (i32, i32) {
    %c0_i32 = arith.constant 0 : i32
    %c0_i32_0 = arith.constant 0 : i32
    return %arg0, %c0_i32 : i32, i32
  }
}

</mosaic_0001>

<bundles_post_ra>
// kernel: tpu_custom_call.1
= control target key start
LH: loop header
LB: loop body
LE: loop exit
PB: predicated region body
PF: predicated region fallthrough
CT: control target
= control target key end

     0   :  { %12 = vsyncpa [#allocation3], 0  ;;  %s1635_s0 = inlined_call_operand.hbm [shape: bf16[16,12], index: 0, kind: input, shape index: {}]   ;;  %s1636_s1 = inlined_call_operand.hbm [shape: bf16[12,512], index: 1, kind: input, shape index: {}]   ;;  %s1637_s2 = inlined_call_operand.hbm [shape: f32[1,512], index: 2, kind: input, shape index: {}]   ;;  %s1638_s3 = inlined_call_operand.hbm [shape: bf16[512,256], index: 3, kind: input, shape index: {}]   ;;  %s1639_s4 = inlined_call_operand.vmem [shape: f32[1,256], index: 4, kind: input, shape index: {}]   ;;  %s1640_s5 = inlined_call_operand.hbm [shape: bf16[256,128], index: 5, kind: input, shape index: {}]   ;;  %s1641_s6 = inlined_call_operand.vmem [shape: f32[1,128], index: 6, kind: input, shape index: {}]   ;;  %s1642_s7 = inlined_call_operand.hbm [shape: f32[16,128], index: 7, kind: output, shape index: {}]  }
   0x1   :  { %13 = vsyncpa [#allocation6], 0 }
   0x2   :  { %14 = vsyncpa [#allocation9], 0  ;;  %s33_s26 = sshll.u32 %s1636_s1, 4  ;;  %s34_s26 = int_to_ptr.hbm [resolvable:$true] %s33_s26 }
   0x3   :  { %15 = vsyncpa [#allocation4], 0  ;;  %s1533_s27 = smov [#allocation5]   ;;  %s57_s8 = sshll.u32 %s1638_s3, 4  ;;  %s58_s8 = int_to_ptr.hbm [resolvable:$true] %s57_s8 }
   0x4   :  { %s35_s28 = sshll.u32 %s1533_s27, 4  ;;  %s1534_s9 = smov 256   ;;  %s36_s28 = int_to_ptr.vmem [resolvable:$true] %s35_s28 }
   0x5   :  { %s1535_s10 = smov 16   ;;  %s1536_s11 = smov [#allocation8]  }
   0x6   :  { %41 = dma.hbm_to_vmem [thread:$0]  %s34_s26, 512, %s36_s28, [#allocation6], %s1534_s9, %s1534_s9, %s1535_s10  }
   0x7   :  { %s59_s12 = sshll.u32 %s1536_s11, 4  ;;  %s1537_s13 = smov 128   ;;  %s60_s12 = int_to_ptr.vmem [resolvable:$true] %s59_s12 }
   0x8   :  { %s1538_s14 = smov 8   ;;  %s20_s16 = sshll.u32 %s1635_s0, 4  ;;  %s21_s16 = int_to_ptr.hbm [resolvable:$true] %s20_s16 }
   0x9   :  { %65 = dma.hbm_to_vmem [thread:$0]  %s58_s8, 8192, %s60_s12, [#allocation9], %s1537_s13, %s1537_s13, %s1538_s14  }
   0xa   :  { %s1539_s17 = smov [#allocation2]   ;;  %s47_s20 = sshll.u32 %s1637_s2, 4  ;;  %s48_s20 = int_to_ptr.hbm [resolvable:$true] %s47_s20 }
   0xb   :  { %s22_s3 = sshll.u32 %s1539_s17, 4  ;;  %s1540_s21 = smov 64   ;;  %s23_s3 = int_to_ptr.vmem [resolvable:$true] %s22_s3 }
   0xc   :  { %s1541_s22 = smov 4   ;;  %s1542_s23 = smov [#allocation7]  }
   0xd   :  { %28 = dma.hbm_to_vmem [thread:$0]  %s21_s16, 128, %s23_s3, [#allocation3], %s1540_s21, %s1540_s21, %s1541_s22  }
   0xe   :  { %s49_s24 = sshll.u32 %s1542_s23, 4  ;;  %s72_s27 = sshll.u32 %s1640_s5, 4  ;;  %s50_s24 = int_to_ptr.vmem [resolvable:$true] %s49_s24  ;;  %s73_s27 = int_to_ptr.hbm [resolvable:$true] %s72_s27 }
   0xf   :  { %52 = dma.hbm_to_vmem [thread:$0]  %s48_s20, 64, %s50_s24, [#allocation6]  }
  0x10   :  { %s1543_s0 = smov [#allocation10]  }
  0x11   :  { %s74_s28 = sshll.u32 %s1543_s0, 4  ;;  %s75_s28 = int_to_ptr.vmem [resolvable:$true] %s74_s28 }
  0x12   :  { %80 = dma.hbm_to_vmem [thread:$0]  %s73_s27, 2048, %s75_s28, [#allocation9], %s1540_s21, %s1540_s21, %s1541_s22  }
  0x13   :  { %1525 = dma.done.wait [#allocation3], 128  }
  0x14   :  { %1526 = vsyncadd [#allocation3], 4294967168 }
  0x15   :  { %1527 = dma.done.wait [#allocation6], 576  }
  0x16   :  { %1528 = vsyncadd [#allocation6], 4294966720 }
  0x17   :  { %1529 = dma.done.wait [#allocation9], 10240  }
  0x18   :  { %1530 = vsyncadd [#allocation9], 4294957056  ;;  %vm145_vm0 = vcmask 1045504   ;;  %v943_v0 = vld [vmem:[#allocation5] sm:$0xf]  ;;  %v1604_v11 = vld [vmem:[#allocation2] sm:$0xff] }
  0x19   :  { %v1286_v1 = vld [vmem:[#allocation5 + $0xc] sm:$0x30]  ;;  %v1284_v2 = vld [vmem:[#allocation5 + $0x4] sm:$0xf]  ;;  %v945_v4 = vld [vmem:[#allocation5 + $0x10] sm:$0x30] }
  0x1a   :  { %v944_v3 = vor.u32 %v1286_v1, %v943_v0  ;;  %v951_v5 = vld [vmem:[#allocation5 + $0x8] sm:$0xf]  ;;  %v948_v6 = vor.u32 %v1284_v2, %v945_v4  ;;  %v1287_v7 = vld [vmem:[#allocation5 + $0x14] sm:$0x30]  ;;  %v1285_v8 = vld [vmem:[#allocation5 + $0xc] sm:$0xf] }
  0x1b   :  { %v953_v9 = vld [vmem:[#allocation5 + $0x18] sm:$0x30]  ;;  %v952_v12 = vor.u32 %v1287_v7, %v951_v5  ;;  %v1019_v14 = vld [vmem:[#allocation8 + $0x70] sm:$0xf]  ;;  %vm141_vm1 = vcmask 97280   ;;  %s1544_s30 = smov [#allocation11]  }
  0x1c   :  { %v147_v10 = vsel %vm145_vm0, %v944_v3, 0  ;;  %v956_v13 = vor.u32 %v1285_v8, %v953_v9  ;;  %v1303_v15 = vld [vmem:[#allocation8 + $0x74] sm:$0xf0]  ;;  %v150_v16 = vsel %vm145_vm0, %v948_v6, 0  ;;  %v1083_v18 = vld [vmem:[#allocation8 + $0xf0] sm:$0xf] }
  0x1d   :  { %165 = vmatpush.bf16.msra.mxu2 %v147_v10  ;;  %v1020_v17 = vor.u32 %v1303_v15, %v1019_v14  ;;  %v1319_v19 = vld [vmem:[#allocation8 + $0xf4] sm:$0xf0]  ;;  %179 = vmatpush.bf16.msra.mxu3 %v150_v16  ;;  %v153_v20 = vsel %vm145_vm0, %v952_v12, 0  ;;  %v1011_v23 = vld [vmem:[#allocation8 + $0x60] sm:$0xf]  ;;  %s920_s8 = sshll.u32 %s1544_s30, 4  ;;  %s921_s8 = int_to_ptr.vmem [resolvable:$true] %s920_s8 }
  0x1e   :  { %v156_v21 = vsel %vm145_vm0, %v956_v13, 0  ;;  %v1084_v22 = vor.u32 %v1319_v19, %v1083_v18  ;;  %v1301_v24 = vld [vmem:[#allocation8 + $0x64] sm:$0xf0]  ;;  %v1075_v25 = vld [vmem:[#allocation8 + $0xe0] sm:$0xf]  ;;  %s922_s11 = sshll.u32 %s1642_s7, 4  ;;  %s923_s11 = int_to_ptr.hbm [resolvable:$true] %s922_s11 }
  0x1f   :  { %v1317_v26 = vld [vmem:[#allocation8 + $0xe4] sm:$0xf0]  ;;  %624 = vmatpush.bf16.msra.mxu0 %v1020_v17  ;;  %v1012_v27 = vor.u32 %v1301_v24, %v1011_v23  ;;  %v1003_v29 = vld [vmem:[#allocation8 + $0x50] sm:$0xf]  ;;  %v1299_v30 = vld [vmem:[#allocation8 + $0x54] sm:$0xf0] }
  0x20   :  { %957 = vmatmul.msk.bf16.vlgmr.msra.gmra.mxu2 %vm141_vm1, %v1604_v11  ;;  %958 = vmatmul.msk.bf16.vlgmr.msra.gmra.mxu3 %vm141_vm1, %v1604_v11  ;;  %v1076_v28 = vor.u32 %v1317_v26, %v1075_v25  ;;  %v1067_v31 = vld [vmem:[#allocation8 + $0xd0] sm:$0xf]  ;;  %v1315_v32 = vld [vmem:[#allocation8 + $0xd4] sm:$0xf0]  ;;  %v1004_v34 = vor.u32 %v1299_v30, %v1003_v29  ;;  %v995_v39 = vld [vmem:[#allocation8 + $0x40] sm:$0xf] }
  0x21   :  { %193 = vmatpush.bf16.msrb.mxu2 %v153_v20  ;;  %207 = vmatpush.bf16.msrb.mxu3 %v156_v21  ;;  %v1147_v33 = vld [vmem:[#allocation8 + $0x170] sm:$0xf]  ;;  %v1335_v35 = vld [vmem:[#allocation8 + $0x174] sm:$0xf0]  ;;  %v1068_v38 = vor.u32 %v1315_v32, %v1067_v31  ;;  %v1297_v40 = vld [vmem:[#allocation8 + $0x44] sm:$0xf0] }
  0x22   :  { %638 = vmatpush.bf16.msra.mxu1 %v1084_v22  ;;  %v1211_v36 = vld [vmem:[#allocation8 + $0x1f0] sm:$0xf]  ;;  %v1351_v37 = vld [vmem:[#allocation8 + $0x1f4] sm:$0xf0]  ;;  %v1059_v41 = vld [vmem:[#allocation8 + $0xc0] sm:$0xf]  ;;  %v1148_v42 = vor.u32 %v1335_v35, %v1147_v33  ;;  %v996_v50 = vor.u32 %v1297_v40, %v995_v39 }
  0x23   :  { %625 = vmatpush.bf16.msra.mxu0 %v1012_v27  ;;  %v1212_v43 = vor.u32 %v1351_v37, %v1211_v36  ;;  %v1313_v44 = vld [vmem:[#allocation8 + $0xc4] sm:$0xf0]  ;;  %v1139_v45 = vld [vmem:[#allocation8 + $0x160] sm:$0xf]  ;;  %v987_v51 = vld [vmem:[#allocation8 + $0x30] sm:$0xf] }
  0x24   :  { %v1333_v46 = vld [vmem:[#allocation8 + $0x164] sm:$0xf0]  ;;  %v1203_v48 = vld [vmem:[#allocation8 + $0x1e0] sm:$0xf]  ;;  %v1295_v52 = vld [vmem:[#allocation8 + $0x34] sm:$0xf0]  ;;  %v1060_v55 = vor.u32 %v1313_v44, %v1059_v41 }
  0x25   :  { %652 = vmatpush.bf16.msra.mxu2 %v1148_v42  ;;  %666 = vmatpush.bf16.msra.mxu3 %v1212_v43  ;;  %v1140_v47 = vor.u32 %v1333_v46, %v1139_v45  ;;  %v1349_v49 = vld [vmem:[#allocation8 + $0x1e4] sm:$0xf0]  ;;  %v1051_v53 = vld [vmem:[#allocation8 + $0xb0] sm:$0xf]  ;;  %v1331_v57 = vld [vmem:[#allocation8 + $0x154] sm:$0xf0]  ;;  %v988_v63 = vor.u32 %v1295_v52, %v987_v51 }
  0x26   :  { %639 = vmatpush.bf16.msra.mxu1 %v1076_v28  ;;  %v1204_v54 = vor.u32 %v1349_v49, %v1203_v48  ;;  %v1131_v56 = vld [vmem:[#allocation8 + $0x150] sm:$0xf]  ;;  %v1311_v59 = vld [vmem:[#allocation8 + $0xb4] sm:$0xf0]  ;;  %v979_v1 = vld [vmem:[#allocation8 + $0x20] sm:$0xf] }
  0x27   :  { %626 = vmatpush.bf16.msra.mxu0 %v1004_v34  ;;  %v1195_v58 = vld [vmem:[#allocation8 + $0x1d0] sm:$0xf]  ;;  %v1347_v60 = vld [vmem:[#allocation8 + $0x1d4] sm:$0xf0]  ;;  %v1132_v61 = vor.u32 %v1331_v57, %v1131_v56  ;;  %v1052_v0 = vor.u32 %v1311_v59, %v1051_v53  ;;  %v1293_v2 = vld [vmem:[#allocation8 + $0x24] sm:$0xf0] }
  0x28   :  { %v1196_v62 = vor.u32 %v1347_v60, %v1195_v58  ;;  %v1043_v3 = vld [vmem:[#allocation8 + $0xa0] sm:$0xf]  ;;  %v1309_v4 = vld [vmem:[#allocation8 + $0xa4] sm:$0xf0]  ;;  %v980_v5 = vor.u32 %v1293_v2, %v979_v1  ;;  %v971_v7 = vld [vmem:[#allocation8 + $0x10] sm:$0xf] }
  0x29   :  { %653 = vmatpush.bf16.msra.mxu2 %v1140_v47  ;;  %667 = vmatpush.bf16.msra.mxu3 %v1204_v54  ;;  %v1044_v6 = vor.u32 %v1309_v4, %v1043_v3  ;;  %v1291_v8 = vld [vmem:[#allocation8 + $0x14] sm:$0xf0]  ;;  %v1035_v9 = vld [vmem:[#allocation8 + $0x90] sm:$0xf]  ;;  %v963_v14 = vld [vmem:[#allocation8] sm:$0xf] }
  0x2a   :  { %640 = vmatpush.bf16.msra.mxu1 %v1068_v38  ;;  %v1307_v10 = vld [vmem:[#allocation8 + $0x94] sm:$0xf0]  ;;  %v972_v12 = vor.u32 %v1291_v8, %v971_v7  ;;  %v1289_v15 = vld [vmem:[#allocation8 + $0x4] sm:$0xf0]  ;;  %v1027_v16 = vld [vmem:[#allocation8 + $0x80] sm:$0xf] }
  0x2b   :  { %627 = vmatpush.bf16.msra.mxu0 %v996_v50  ;;  %v1036_v13 = vor.u32 %v1307_v10, %v1035_v9  ;;  %v964_v17 = vor.u32 %v1289_v15, %v963_v14  ;;  %v1305_v18 = vld [vmem:[#allocation8 + $0x84] sm:$0xf0]  ;;  %v1123_v19 = vld [vmem:[#allocation8 + $0x140] sm:$0xf]  ;;  %v1302_v25 = vld [vmem:[#allocation8 + $0x74] sm:$0xf] }
  0x2c   :  { %v1028_v20 = vor.u32 %v1305_v18, %v1027_v16  ;;  %v1187_v21 = vld [vmem:[#allocation8 + $0x1c0] sm:$0xf]  ;;  %v1345_v22 = vld [vmem:[#allocation8 + $0x1c4] sm:$0xf0]  ;;  %v1021_v26 = vld [vmem:[#allocation8 + $0x78] sm:$0xf0] }
  0x2d   :  { %654 = vmatpush.bf16.msra.mxu2 %v1132_v61  ;;  %668 = vmatpush.bf16.msra.mxu3 %v1196_v62  ;;  %v1188_v24 = vor.u32 %v1345_v22, %v1187_v21  ;;  %v1318_v27 = vld [vmem:[#allocation8 + $0xf4] sm:$0xf]  ;;  %v1024_v28 = vor.u32 %v1302_v25, %v1021_v26  ;;  %v1085_v29 = vld [vmem:[#allocation8 + $0xf8] sm:$0xf0]  ;;  %v1115_v30 = vld [vmem:[#allocation8 + $0x130] sm:$0xf] }
  0x2e   :  { %641 = vmatpush.bf16.msra.mxu1 %v1060_v55  ;;  %v1327_v31 = vld [vmem:[#allocation8 + $0x134] sm:$0xf0]  ;;  %v1088_v32 = vor.u32 %v1318_v27, %v1085_v29  ;;  %v1179_v34 = vld [vmem:[#allocation8 + $0x1b0] sm:$0xf]  ;;  %v1300_v36 = vld [vmem:[#allocation8 + $0x64] sm:$0xf] }
  0x2f   :  { %628 = vmatpush.bf16.msra.mxu0 %v988_v63  ;;  %v1116_v33 = vor.u32 %v1327_v31, %v1115_v30  ;;  %v1343_v35 = vld [vmem:[#allocation8 + $0x1b4] sm:$0xf0]  ;;  %v1013_v38 = vld [vmem:[#allocation8 + $0x68] sm:$0xf0]  ;;  %v1316_v39 = vld [vmem:[#allocation8 + $0xe4] sm:$0xf] }
  0x30   :  { %959 = vmatmul.msk.bf16.vlgmr.msrb.gmra.mxu2 %vm141_vm1, %v1604_v11  ;;  %960 = vmatmul.msk.bf16.vlgmr.msrb.gmra.mxu3 %vm141_vm1, %v1604_v11  ;;  %v1329_v11 = vld [vmem:[#allocation8 + $0x144] sm:$0xf0]  ;;  %v1180_v37 = vor.u32 %v1343_v35, %v1179_v34  ;;  %v1077_v40 = vld [vmem:[#allocation8 + $0xe8] sm:$0xf0]  ;;  %v1016_v41 = vor.u32 %v1300_v36, %v1013_v38  ;;  %v1107_v43 = vld [vmem:[#allocation8 + $0x120] sm:$0xf] }
  0x31   :  { %v1124_v23 = vor.u32 %v1329_v11, %v1123_v19  ;;  %669 = vmatpush.bf16.msra.mxu3 %v1188_v24  ;;  %v1080_v42 = vor.u32 %v1316_v39, %v1077_v40  ;;  %v1325_v44 = vld [vmem:[#allocation8 + $0x124] sm:$0xf0]  ;;  %v1171_v45 = vld [vmem:[#allocation8 + $0x1a0] sm:$0xf]  ;;  %v1298_v48 = vld [vmem:[#allocation8 + $0x54] sm:$0xf] }
  0x32   :  { %642 = vmatpush.bf16.msra.mxu1 %v1052_v0  ;;  %v1108_v46 = vor.u32 %v1325_v44, %v1107_v43  ;;  %v1341_v47 = vld [vmem:[#allocation8 + $0x1a4] sm:$0xf0]  ;;  %v1005_v49 = vld [vmem:[#allocation8 + $0x58] sm:$0xf0]  ;;  %v1314_v52 = vld [vmem:[#allocation8 + $0xd4] sm:$0xf] }
  0x33   :  { %629 = vmatpush.bf16.msra.mxu0 %v980_v5  ;;  %655 = vmatpush.bf16.msra.mxu2 %v1124_v23  ;;  %v1172_v50 = vor.u32 %v1341_v47, %v1171_v45  ;;  %v1008_v51 = vor.u32 %v1298_v48, %v1005_v49  ;;  %v1069_v53 = vld [vmem:[#allocation8 + $0xd8] sm:$0xf0]  ;;  %v1099_v55 = vld [vmem:[#allocation8 + $0x110] sm:$0xf]  ;;  %v1323_v56 = vld [vmem:[#allocation8 + $0x114] sm:$0xf0] }
  0x34   :  { %v1072_v54 = vor.u32 %v1314_v52, %v1069_v53  ;;  %v1163_v57 = vld [vmem:[#allocation8 + $0x190] sm:$0xf]  ;;  %v1100_v58 = vor.u32 %v1323_v56, %v1099_v55  ;;  %v1339_v59 = vld [vmem:[#allocation8 + $0x194] sm:$0xf0]  ;;  %v1296_v60 = vld [vmem:[#allocation8 + $0x44] sm:$0xf] }
  0x35   :  { %670 = vmatpush.bf16.msra.mxu3 %v1180_v37  ;;  %v997_v61 = vld [vmem:[#allocation8 + $0x48] sm:$0xf0]  ;;  %v1164_v62 = vor.u32 %v1339_v59, %v1163_v57  ;;  %v1312_v0 = vld [vmem:[#allocation8 + $0xc4] sm:$0xf]  ;;  %v1091_v3 = vld [vmem:[#allocation8 + $0x100] sm:$0xf] }
  0x36   :  { %643 = vmatpush.bf16.msra.mxu1 %v1044_v6  ;;  %v1000_v63 = vor.u32 %v1296_v60, %v997_v61  ;;  %v1061_v1 = vld [vmem:[#allocation8 + $0xc8] sm:$0xf0]  ;;  %v1321_v4 = vld [vmem:[#allocation8 + $0x104] sm:$0xf0]  ;;  %v1155_v5 = vld [vmem:[#allocation8 + $0x180] sm:$0xf] }
  0x37   :  { %630 = vmatpush.bf16.msra.mxu0 %v972_v12  ;;  %656 = vmatpush.bf16.msra.mxu2 %v1116_v33  ;;  %v1064_v2 = vor.u32 %v1312_v0, %v1061_v1  ;;  %v1092_v6 = vor.u32 %v1321_v4, %v1091_v3  ;;  %v1337_v7 = vld [vmem:[#allocation8 + $0x184] sm:$0xf0]  ;;  %v1294_v8 = vld [vmem:[#allocation8 + $0x34] sm:$0xf]  ;;  %v989_v10 = vld [vmem:[#allocation8 + $0x38] sm:$0xf0] }
  0x38   :  { %v1156_v9 = vor.u32 %v1337_v7, %v1155_v5  ;;  %v1310_v12 = vld [vmem:[#allocation8 + $0xb4] sm:$0xf]  ;;  %v992_v14 = vor.u32 %v1294_v8, %v989_v10  ;;  %v1292_v21 = vld [vmem:[#allocation8 + $0x24] sm:$0xf]  ;;  %v981_v22 = vld [vmem:[#allocation8 + $0x28] sm:$0xf0] }
  0x39   :  { %671 = vmatpush.bf16.msra.mxu3 %v1172_v50  ;;  %v1334_v16 = vld [vmem:[#allocation8 + $0x174] sm:$0xf]  ;;  %v1308_v23 = vld [vmem:[#allocation8 + $0xa4] sm:$0xf]  ;;  %v984_v24 = vor.u32 %v1292_v21, %v981_v22  ;;  %v1045_v25 = vld [vmem:[#allocation8 + $0xa8] sm:$0xf0] }
  0x3a   :  { %644 = vmatpush.bf16.msra.mxu1 %v1036_v13  ;;  %v1053_v13 = vld [vmem:[#allocation8 + $0xb8] sm:$0xf0]  ;;  %v1350_v18 = vld [vmem:[#allocation8 + $0x1f4] sm:$0xf]  ;;  %v1332_v26 = vld [vmem:[#allocation8 + $0x164] sm:$0xf] }
  0x3b   :  { %631 = vmatpush.bf16.msra.mxu0 %v964_v17  ;;  %657 = vmatpush.bf16.msra.mxu2 %v1108_v46  ;;  %v1056_v15 = vor.u32 %v1310_v12, %v1053_v13  ;;  %v1149_v17 = vld [vmem:[#allocation8 + $0x178] sm:$0xf0]  ;;  %v1141_v27 = vld [vmem:[#allocation8 + $0x168] sm:$0xf0]  ;;  %v1348_v30 = vld [vmem:[#allocation8 + $0x1e4] sm:$0xf] }
  0x3c   :  { %v1152_v19 = vor.u32 %v1334_v16, %v1149_v17  ;;  %v1144_v29 = vor.u32 %v1332_v26, %v1141_v27  ;;  %v1205_v31 = vld [vmem:[#allocation8 + $0x1e8] sm:$0xf0]  ;;  %v1290_v33 = vld [vmem:[#allocation8 + $0x14] sm:$0xf]  ;;  %v973_v34 = vld [vmem:[#allocation8 + $0x18] sm:$0xf0] }
  0x3d   :  { %672 = vmatpush.bf16.msra.mxu3 %v1164_v62  ;;  %v1306_v35 = vld [vmem:[#allocation8 + $0x94] sm:$0xf]  ;;  %v976_v36 = vor.u32 %v1290_v33, %v973_v34  ;;  %v1037_v37 = vld [vmem:[#allocation8 + $0x98] sm:$0xf0]  ;;  %v1288_v45 = vld [vmem:[#allocation8 + $0x4] sm:$0xf] }
  0x3e   :  { %645 = vmatpush.bf16.msra.mxu1 %v1028_v20  ;;  %v1213_v20 = vld [vmem:[#allocation8 + $0x1f8] sm:$0xf0]  ;;  %v1330_v38 = vld [vmem:[#allocation8 + $0x154] sm:$0xf]  ;;  %v1040_v40 = vor.u32 %v1306_v35, %v1037_v37  ;;  %v965_v46 = vld [vmem:[#allocation8 + $0x8] sm:$0xf0] }
  0x3f   :  { %680 = vmatpush.bf16.msrb.mxu0 %v1024_v28  ;;  %658 = vmatpush.bf16.msra.mxu2 %v1100_v58  ;;  %v1216_v11 = vor.u32 %v1350_v18, %v1213_v20  ;;  %v1048_v28 = vor.u32 %v1308_v23, %v1045_v25  ;;  %v1133_v39 = vld [vmem:[#allocation8 + $0x158] sm:$0xf0]  ;;  %v1304_v47 = vld [vmem:[#allocation8 + $0x84] sm:$0xf]  ;;  %v968_v48 = vor.u32 %v1288_v45, %v965_v46  ;;  %v1029_v49 = vld [vmem:[#allocation8 + $0x88] sm:$0xf0] }
  0x40   :  { %v1197_v43 = vld [vmem:[#allocation8 + $0x1d8] sm:$0xf0]  ;;  %v1328_v50 = vld [vmem:[#allocation8 + $0x144] sm:$0xf]  ;;  %v1032_v53 = vor.u32 %v1304_v47, %v1029_v49  ;;  %v1189_v56 = vld [vmem:[#allocation8 + $0x1c8] sm:$0xf0] }
  0x41   :  { %673 = vmatpush.bf16.msra.mxu3 %v1156_v9  ;;  %v1617_v52 = vld [vmem:[#allocation7] sm:$0xf]  ;;  %v1344_v55 = vld [vmem:[#allocation8 + $0x1c4] sm:$0xf]  ;;  %v1326_v59 = vld [vmem:[#allocation8 + $0x134] sm:$0xf] }
  0x42   :  { %694 = vmatpush.bf16.msrb.mxu1 %v1088_v32  ;;  %v1208_v32 = vor.u32 %v1348_v30, %v1205_v31  ;;  %v1192_v57 = vor.u32 %v1344_v55, %v1189_v56  ;;  %v1117_v60 = vld [vmem:[#allocation8 + $0x138] sm:$0xf0]  ;;  %v1342_v61 = vld [vmem:[#allocation8 + $0x1b4] sm:$0xf]  ;;  %v112_v62 = vperm.slane %v1617_v52, 0 }
  0x43   :  { %681 = vmatpush.bf16.msrb.mxu0 %v1016_v41  ;;  %659 = vmatpush.bf16.msra.mxu2 %v1092_v6  ;;  %v1136_v41 = vor.u32 %v1330_v38, %v1133_v39  ;;  %v1120_v0 = vor.u32 %v1326_v59, %v1117_v60  ;;  %v1181_v1 = vld [vmem:[#allocation8 + $0x1b8] sm:$0xf0]  ;;  %v1324_v4 = vld [vmem:[#allocation8 + $0x124] sm:$0xf]  ;;  %v1109_v5 = vld [vmem:[#allocation8 + $0x128] sm:$0xf0] }
  0x44   :  { %v1184_v3 = vor.u32 %v1342_v61, %v1181_v1  ;;  %v1340_v6 = vld [vmem:[#allocation8 + $0x1a4] sm:$0xf]  ;;  %v1173_v7 = vld [vmem:[#allocation8 + $0x1a8] sm:$0xf0]  ;;  %v1112_v9 = vor.u32 %v1324_v4, %v1109_v5  ;;  %v1322_v13 = vld [vmem:[#allocation8 + $0x114] sm:$0xf] }
  0x45   :  { %722 = vmatpush.bf16.msrb.mxu3 %v1216_v11  ;;  %v1176_v12 = vor.u32 %v1340_v6, %v1173_v7  ;;  %v1165_v16 = vld [vmem:[#allocation8 + $0x198] sm:$0xf0]  ;;  %v1093_v25 = vld [vmem:[#allocation8 + $0x108] sm:$0xf0]  ;;  %v1336_v27 = vld [vmem:[#allocation8 + $0x184] sm:$0xf] }
  0x46   :  { %695 = vmatpush.bf16.msrb.mxu1 %v1080_v42  ;;  %v1346_v42 = vld [vmem:[#allocation8 + $0x1d4] sm:$0xf]  ;;  %v114_v39 = vperm.slane %v1617_v52, 2  ;;  %v1357_v60 = vld [vmem:[#allocation10 + $0x28] sm:$0xff]  ;;  %v1356_v61 = vld [vmem:[#allocation10 + $0x20] sm:$0xff] }
  0x47   :  { %682 = vmatpush.bf16.msrb.mxu0 %v1008_v51  ;;  %708 = vmatpush.bf16.msrb.mxu2 %v1152_v19  ;;  %v1200_v44 = vor.u32 %v1346_v42, %v1197_v43  ;;  %v1125_v51 = vld [vmem:[#allocation8 + $0x148] sm:$0xf0]  ;;  %v1358_v59 = vld [vmem:[#allocation10 + $0x30] sm:$0xff]  ;;  %v1352_v4 = vld [vmem:[#allocation10] sm:$0xff] }
  0x48   :  { %v1366_v1 = vld [vmem:[#allocation10 + $0x70] sm:$0xff]  ;;  %v1364_v5 = vld [vmem:[#allocation10 + $0x60] sm:$0xff]  ;;  %v1363_v7 = vld [vmem:[#allocation10 + $0x58] sm:$0xff] }
  0x49   :  { %723 = vmatpush.bf16.msrb.mxu3 %v1208_v32 }
  0x4a   :  { %696 = vmatpush.bf16.msrb.mxu1 %v1072_v54  ;;  %v1128_v54 = vor.u32 %v1328_v50, %v1125_v51 }
  0x4b   :  { %683 = vmatpush.bf16.msrb.mxu0 %v1000_v63  ;;  %709 = vmatpush.bf16.msrb.mxu2 %v1144_v29 }
  0x4d   :  { %724 = vmatpush.bf16.msrb.mxu3 %v1200_v44 }
  0x4e   :  { %697 = vmatpush.bf16.msrb.mxu1 %v1064_v2  ;;  %v113_v2 = vperm.slane %v1617_v52, 1 }
  0x4f   :  { %684 = vmatpush.bf16.msrb.mxu0 %v992_v14  ;;  %710 = vmatpush.bf16.msrb.mxu2 %v1136_v41  ;;  %v1101_v14 = vld [vmem:[#allocation8 + $0x118] sm:$0xf0]  ;;  %v115_v41 = vperm.slane %v1617_v52, 3 }
  0x50   :  { %v1104_v11 = vor.u32 %v1322_v13, %v1101_v14  ;;  %v1359_v52 = vld [vmem:[#allocation10 + $0x38] sm:$0xff]  ;;  %v1361_v13 = vld [vmem:[#allocation10 + $0x48] sm:$0xff] }
  0x51   :  { %725 = vmatpush.bf16.msrb.mxu3 %v1192_v57 }
  0x52   :  { %698 = vmatpush.bf16.msrb.mxu1 %v1056_v15  ;;  %v1338_v15 = vld [vmem:[#allocation8 + $0x194] sm:$0xf] }
  0x53   :  { %685 = vmatpush.bf16.msrb.mxu0 %v984_v24  ;;  %711 = vmatpush.bf16.msrb.mxu2 %v1128_v54  ;;  %v1168_v23 = vor.u32 %v1338_v15, %v1165_v16  ;;  %v1320_v24 = vld [vmem:[#allocation8 + $0x104] sm:$0xf] }
  0x54   :  { %v1096_v32 = vor.u32 %v1320_v24, %v1093_v25  ;;  %v1360_v16 = vld [vmem:[#allocation10 + $0x40] sm:$0xff] }
  0x55   :  { %726 = vmatpush.bf16.msrb.mxu3 %v1184_v3  ;;  %v1365_v3 = vld [vmem:[#allocation10 + $0x68] sm:$0xff] }
  0x56   :  { %699 = vmatpush.bf16.msrb.mxu1 %v1048_v28  ;;  %v1157_v28 = vld [vmem:[#allocation8 + $0x188] sm:$0xf0] }
  0x57   :  { %686 = vmatpush.bf16.msrb.mxu0 %v976_v36  ;;  %712 = vmatpush.bf16.msrb.mxu2 %v1120_v0  ;;  %v1160_v35 = vor.u32 %v1336_v27, %v1157_v28  ;;  %v1354_v0 = vld [vmem:[#allocation10 + $0x10] sm:$0xff] }
  0x59   :  { %727 = vmatpush.bf16.msrb.mxu3 %v1176_v12 }
  0x5a   :  { %700 = vmatpush.bf16.msrb.mxu1 %v1040_v40 }
  0x5b   :  { %687 = vmatpush.bf16.msrb.mxu0 %v968_v48  ;;  %713 = vmatpush.bf16.msrb.mxu2 %v1112_v9  ;;  %v1362_v9 = vld [vmem:[#allocation10 + $0x50] sm:$0xff] }
  0x5d   :  { %728 = vmatpush.bf16.msrb.mxu3 %v1168_v23 }
  0x5e   :  { %701 = vmatpush.bf16.msrb.mxu1 %v1032_v53 }
  0x5f   :  { %714 = vmatpush.bf16.msrb.mxu2 %v1104_v11 }
  0x61   :  { %729 = vmatpush.bf16.msrb.mxu3 %v1160_v35 }
  0x63   :  { %715 = vmatpush.bf16.msrb.mxu2 %v1096_v32 }
  0xa3   :  { %v167_v58 = vpop.f32.mrf.mxu2  ;;  %v181_v63 = vpop.f32.mrf.mxu3 }
  0xa4   :  { %v168_v8 = vadd.f32 %v167_v58, %v112_v62  ;;  %v182_v10 = vadd.f32 %v181_v63, %v113_v2  ;;  %v1367_v63 = vld [vmem:[#allocation10 + $0x78] sm:$0xff] }
  0xa6   :  { %v214_v18 = vmul.f32 0.01, %v168_v8  ;;  %v215_v21 = vmul.f32 0.01, %v182_v10 }
  0xa8   :  { %v222_v30 = vmax.f32 %v168_v8, %v214_v18  ;;  %v223_v33 = vmax.f32 %v182_v10, %v215_v21  ;;  %v298_v8 = vld [vmem:[%s1639_s4] sm:$0x3] }
  0xa9   :  { %v300_v12 = vperm.slane %v298_v8, 0 }
  0xab   :  { %v169_v17 = vpop.f32.mrf.mxu2  ;;  %v183_v20 = vpop.f32.mrf.mxu3 }
  0xac   :  { %v170_v19 = vadd.f32 %v169_v17, %v112_v62  ;;  %v184_v22 = vadd.f32 %v183_v20, %v113_v2  ;;  %v1355_v62 = vld [vmem:[#allocation10 + $0x18] sm:$0xff]  ;;  %v1353_v2 = vld [vmem:[#allocation10 + $0x8] sm:$0xff] }
  0xae   :  { %v218_v26 = vmul.f32 0.01, %v170_v19  ;;  %v219_v29 = vmul.f32 0.01, %v184_v22 }
  0xb0   :  { %v226_v31 = vmax.f32 %v170_v19, %v218_v26  ;;  %v227_v34 = vmax.f32 %v184_v22, %v219_v29  ;;  %v301_v26 = vperm.slane %v298_v8, 1 }
  0xb2   :  { %v230_v36 = vpack.c.bf16 %v226_v31, %v222_v30  ;;  %v231_v38 = vpack.c.bf16 %v227_v34, %v223_v33 }
  0xb3   :  { %v195_v37 = vpop.f32.mrf.mxu2  ;;  %v209_v40 = vpop.f32.mrf.mxu3 }
  0xb4   :  { %632 = vmatmul.bf16.vlgmr.msra.gmra.mxu0 %v230_v36  ;;  %646 = vmatmul.bf16.vlgmr.msra.gmra.mxu1 %v231_v38  ;;  %v196_v42 = vadd.f32 %v195_v37, %v114_v39  ;;  %v210_v43 = vadd.f32 %v209_v40, %v115_v41 }
  0xb5   :  { %878 = vmatpush.bf16.msra.mxu0 %v1359_v52  ;;  %892 = vmatpush.bf16.msra.mxu1 %v1367_v63 }
  0xb6   :  { %v216_v45 = vmul.f32 0.01, %v196_v42  ;;  %v217_v48 = vmul.f32 0.01, %v210_v43 }
  0xb8   :  { %v224_v53 = vmax.f32 %v196_v42, %v216_v45  ;;  %v225_v55 = vmax.f32 %v210_v43, %v217_v48 }
  0xb9   :  { %879 = vmatpush.bf16.msra.mxu0 %v1358_v59  ;;  %893 = vmatpush.bf16.msra.mxu1 %v1366_v1 }
  0xbb   :  { %v197_v44 = vpop.f32.mrf.mxu2  ;;  %v211_v47 = vpop.f32.mrf.mxu3 }
  0xbc   :  { %v198_v46 = vadd.f32 %v197_v44, %v114_v39  ;;  %v212_v49 = vadd.f32 %v211_v47, %v115_v41 }
  0xbd   :  { %880 = vmatpush.bf16.msra.mxu0 %v1357_v60  ;;  %894 = vmatpush.bf16.msra.mxu1 %v1365_v3 }
  0xbe   :  { %v220_v50 = vmul.f32 0.01, %v198_v46  ;;  %v221_v51 = vmul.f32 0.01, %v212_v49 }
  0xc0   :  { %v228_v54 = vmax.f32 %v198_v46, %v220_v50  ;;  %v229_v56 = vmax.f32 %v212_v49, %v221_v51 }
  0xc1   :  { %881 = vmatpush.bf16.msra.mxu0 %v1356_v61  ;;  %895 = vmatpush.bf16.msra.mxu1 %v1364_v5 }
  0xc2   :  { %v232_v57 = vpack.c.bf16 %v228_v54, %v224_v53  ;;  %v233_v58 = vpack.c.bf16 %v229_v56, %v225_v55 }
  0xc4   :  { %660 = vmatmul.bf16.vlgmr.msra.gmra.mxu2 %v232_v57  ;;  %688 = vmatmul.bf16.vlgmr.msrb.gmra.mxu0 %v230_v36 }
  0xc5   :  { %674 = vmatmul.bf16.vlgmr.msra.gmra.mxu3 %v233_v58  ;;  %702 = vmatmul.bf16.vlgmr.msrb.gmra.mxu1 %v231_v38 }
  0xc6   :  { %882 = vmatpush.bf16.msra.mxu0 %v1355_v62  ;;  %896 = vmatpush.bf16.msra.mxu1 %v1363_v7 }
  0xca   :  { %883 = vmatpush.bf16.msra.mxu0 %v1354_v0  ;;  %897 = vmatpush.bf16.msra.mxu1 %v1362_v9 }
  0xce   :  { %884 = vmatpush.bf16.msra.mxu0 %v1353_v2  ;;  %898 = vmatpush.bf16.msra.mxu1 %v1361_v13 }
  0xd2   :  { %885 = vmatpush.bf16.msra.mxu0 %v1352_v4  ;;  %899 = vmatpush.bf16.msra.mxu1 %v1360_v16 }
  0xd4   :  { %716 = vmatmul.bf16.vlgmr.msrb.gmra.mxu2 %v232_v57  ;;  %v1380_v57 = vld [vmem:[%s1641_s6] ss:$0 sm:$0xff] }
  0xd5   :  { %730 = vmatmul.bf16.vlgmr.msrb.gmra.mxu3 %v233_v58 }
 0x131   :  { %v633_v6 = vpop.f32.mrf.mxu0  ;;  %v647_v10 = vpop.f32.mrf.mxu1 }
 0x132   :  { %v634_v15 = vadd.f32 %v633_v6, %v300_v12 }
 0x134   :  { %v648_v18 = vadd.f32 %v647_v10, %v634_v15 }
 0x139   :  { %v635_v14 = vpop.f32.mrf.mxu0  ;;  %v649_v20 = vpop.f32.mrf.mxu1 }
 0x13a   :  { %v636_v11 = vadd.f32 %v635_v14, %v300_v12 }
 0x13c   :  { %v650_v23 = vadd.f32 %v649_v20, %v636_v11 }
 0x141   :  { %v689_v22 = vpop.f32.mrf.mxu0 }
 0x142   :  { %v703_v31 = vpop.f32.mrf.mxu1  ;;  %v690_v32 = vadd.f32 %v689_v22, %v301_v26 }
 0x144   :  { %v704_v38 = vadd.f32 %v703_v31, %v690_v32 }
 0x147   :  { %v661_v17 = vpop.f32.mrf.mxu2 }
 0x148   :  { %v675_v19 = vpop.f32.mrf.mxu3  ;;  %v662_v21 = vadd.f32 %v661_v17, %v648_v18 }
 0x149   :  { %v691_v36 = vpop.f32.mrf.mxu0 }
 0x14a   :  { %v676_v24 = vadd.f32 %v675_v19, %v662_v21  ;;  %v692_v41 = vadd.f32 %v691_v36, %v301_v26  ;;  %v705_v43 = vpop.f32.mrf.mxu1 }
 0x14c   :  { %v736_v29 = vmul.f32 0.01, %v676_v24  ;;  %v706_v44 = vadd.f32 %v705_v43, %v692_v41 }
 0x14e   :  { %v740_v34 = vmax.f32 %v676_v24, %v736_v29 }
 0x14f   :  { %v663_v25 = vpop.f32.mrf.mxu2 }
 0x150   :  { %v664_v27 = vadd.f32 %v663_v25, %v650_v23  ;;  %v677_v28 = vpop.f32.mrf.mxu3 }
 0x152   :  { %v678_v30 = vadd.f32 %v677_v28, %v664_v27 }
 0x154   :  { %v738_v33 = vmul.f32 0.01, %v678_v30 }
 0x156   :  { %v742_v35 = vmax.f32 %v678_v30, %v738_v33 }
 0x157   :  { %v717_v37 = vpop.f32.mrf.mxu2 }
 0x158   :  { %v744_v39 = vpack.c.bf16 %v742_v35, %v740_v34  ;;  %v731_v40 = vpop.f32.mrf.mxu3  ;;  %v718_v42 = vadd.f32 %v717_v37, %v704_v38 }
 0x15a   :  { %886 = vmatmul.bf16.vlgmr.msra.gmra.mxu0 %v744_v39  ;;  %v732_v45 = vadd.f32 %v731_v40, %v718_v42 }
 0x15c   :  { %v737_v49 = vmul.f32 0.01, %v732_v45 }
 0x15e   :  { %v741_v53 = vmax.f32 %v732_v45, %v737_v49 }
 0x15f   :  { %v719_v46 = vpop.f32.mrf.mxu2 }
 0x160   :  { %v720_v47 = vadd.f32 %v719_v46, %v706_v44  ;;  %v733_v48 = vpop.f32.mrf.mxu3 }
 0x162   :  { %v734_v50 = vadd.f32 %v733_v48, %v720_v47 }
 0x164   :  { %v739_v51 = vmul.f32 0.01, %v734_v50 }
 0x166   :  { %v743_v54 = vmax.f32 %v734_v50, %v739_v51 }
 0x168   :  { %v745_v55 = vpack.c.bf16 %v743_v54, %v741_v53 }
 0x16a   :  { %900 = vmatmul.bf16.vlgmr.msra.gmra.mxu1 %v745_v55 }
 0x1d7   :  { %v887_v56 = vpop.f32.mrf.mxu0 }
 0x1d8   :  { %v888_v58 = vadd.f32 %v1380_v57, %v887_v56 }
 0x1df   :  { %v889_v61 = vpop.f32.mrf.mxu0 }
 0x1e0   :  { %v890_v63 = vadd.f32 %v1380_v57, %v889_v61 }
 0x1e7   :  { %v901_v52 = vpop.f32.mrf.mxu1 }
 0x1e8   :  { %v902_v59 = vadd.f32 %v901_v52, %v888_v58 }
 0x1ea   :  { %v906_v60 = vmul.f32 0.01, %v902_v59 }
 0x1ec   :  { %v908_v62 = vmax.f32 %v902_v59, %v906_v60 }
 0x1ee   :  { %v1281_v0 = vclamps-f32 %v908_v62, 2000.0 }
 0x1ef   :  { %v903_v1 = vpop.f32.mrf.mxu1 }
 0x1f0   :  { %914 = vst [vmem:[#allocation11] sm:$0xff] %v1281_v0  ;;  %v904_v2 = vadd.f32 %v903_v1, %v890_v63 }
 0x1f2   :  { %v907_v3 = vmul.f32 0.01, %v904_v2 }
 0x1f4   :  { %v909_v4 = vmax.f32 %v904_v2, %v907_v3 }
 0x1f6   :  { %v1282_v5 = vclamps-f32 %v909_v4, 2000.0 }
 0x1f8   :  { %915 = vst [vmem:[#allocation11 + $0x8] sm:$0xff] %v1282_v5 }
 0x1f9   :  { %928 = dma.vmem_to_hbm [thread:$0]  %s921_s8, 256, %s923_s11, [#allocation4], %s1537_s13, %s1537_s13, %s1538_s14  }
 0x1fa   :  { %1531 = dma.done.wait [#allocation4], 256  }
 0x1fb   :  { %1532 = vsyncadd [#allocation4], 4294967040 }
 0x1fc   :  { %933 = vsyncpa [#allocation3], 1 }
 0x1fd   :  { %934 = vsyncpa [#allocation6], 1 }
 0x1fe   :  { %935 = vsyncpa [#allocation9], 1 }
 0x1ff   :  { %936 = vsyncpa [#allocation4], 1 }

</bundles_post_ra>
